<compile_context>
chip_gen: v7x
topology: tpu7x:2x2x1
jax: 0.10.0
libtpu: 0.0.40
codegen_flags: <defaults>
</compile_context>

<pallas_src>
import jax
import jax.numpy as jnp
from jax.experimental import pallas as pl
from jax.experimental.pallas import tpu as pltpu

LANE_ALIGN = 256    # MXU-friendly (v6e/v7x 2x256x256); also a multiple of 128 (v5e)
TOKEN_ALIGN = 128   # token-tile granularity (covers bf16/int8 sublane packing)


def _round_up(v, m):
    return (v + m - 1) // m * m


# ------------------------------ kernels ------------------------------------

def _ffn_kernel_out_acc(x_ref, w1_ref, b1_ref, w2_ref, b2_ref, o_ref):
    """One (token_tile, ff_chunk) step, accumulating directly into the f32
    output block (which is VMEM-resident across the ff axis)."""
    k = pl.program_id(1)

    @pl.when(k == 0)
    def _():
        o_ref[...] = jnp.broadcast_to(b2_ref[...], o_ref.shape).astype(o_ref.dtype)

    h = jnp.dot(x_ref[...], w1_ref[...], preferred_element_type=jnp.float32)
    h = jnp.maximum(h + b1_ref[...], 0.0)
    # Bare dot-accumulate (lets v7x use MRB in-place accumulation).
    o_ref[...] += jnp.dot(h.astype(w2_ref.dtype), w2_ref[...],
                          preferred_element_type=jnp.float32)


def _ffn_kernel_scratch_acc(x_ref, w1_ref, b1_ref, w2_ref, b2_ref, o_ref, acc_ref):
    """Same step with an f32 VMEM scratch accumulator (non-f32 output dtype)."""
    k = pl.program_id(1)

    @pl.when(k == 0)
    def _():
        acc_ref[...] = jnp.broadcast_to(b2_ref[...], acc_ref.shape)

    h = jnp.dot(x_ref[...], w1_ref[...], preferred_element_type=jnp.float32)
    h = jnp.maximum(h + b1_ref[...], 0.0)
    acc_ref[...] += jnp.dot(h.astype(w2_ref.dtype), w2_ref[...],
                            preferred_element_type=jnp.float32)

    @pl.when(k == pl.num_programs(1) - 1)
    def _():
        o_ref[...] = acc_ref[...].astype(o_ref.dtype)


# ------------------------- tile / VMEM budgeting ----------------------------

def _vmem_caps():
    """(vmem_limit ceiling, tile-footprint budget), per chip generation."""
    phys = 64 << 20                      # conservative default: v7x per-TC VMEM
    try:
        info = pltpu.get_tpu_info()
        phys = int(getattr(info, "vmem_capacity_bytes", phys)) or phys
    except Exception:
        pass
    limit_cap = min(int(phys * 0.85), phys - (8 << 20))   # ~54 MiB v7x, ~108 MiB v5e/v6e
    budget = max(limit_cap - (6 << 20), 16 << 20)
    return limit_cap, budget


def _footprint_bytes(tm, tff, d_model_p, isz):
    """Conservative VMEM footprint (f32 output + f32 scratch worst case)."""
    osz = 4
    return (2 * tm * d_model_p * isz          # x tile (double-buffered)
            + 2 * d_model_p * tff * isz       # W1 chunk
            + 2 * tff * 4                     # b1 chunk (f32)
            + 2 * tff * d_model_p * isz       # W2 chunk
            + 2 * d_model_p * 4               # b2 (f32)
            + 2 * tm * d_model_p * osz        # output tile
            + tm * d_model_p * 4              # f32 accumulator scratch
            + tm * tff * 4 + tm * tff * isz)  # h intermediate (f32 + cast copy)


def _select_tiles(d_model_p, d_ff, isz, token_tile, ff_tile, budget):
    """Pick (tm, tff, d_ff_p): largest ff chunk that fits the VMEM budget,
    preferring full weight residency (tff == padded d_ff)."""
    osz = 4
    d_ff_min = _round_up(d_ff, LANE_ALIGN)
    tm = max(TOKEN_ALIGN, _round_up(token_tile, TOKEN_ALIGN))
    while True:
        base = (2 * tm * d_model_p * isz + 2 * d_model_p * 4
                + 2 * tm * d_model_p * osz + tm * d_model_p * 4)
        per_tff = 4 * d_model_p * isz + 8 + tm * (4 + isz)
        max_tff = ((budget - base) // per_tff // LANE_ALIGN) * LANE_ALIGN
        if ff_tile is not None:
            max_tff = min(max_tff, _round_up(ff_tile, LANE_ALIGN))
        if max_tff >= LANE_ALIGN or tm <= TOKEN_ALIGN:
            break
        tm = max(TOKEN_ALIGN, tm // 2)        # shrink token tile before ff chunk
    tff = max(LANE_ALIGN, min(max_tff, d_ff_min))
    d_ff_p = _round_up(d_ff, tff)
    return tm, tff, d_ff_p


# ------------------------------ host wrappers -------------------------------

def prepare_ffn_params(w1, b1, w2, b2, *, compute_dtype=jnp.bfloat16,
                       token_tile=512, ff_tile=None):
    """One-time setup: cast weights to the compute dtype, zero-pad to aligned
    shapes, and pick tiles / VMEM limit. Do this once, not per call."""
    d_model, d_ff = w1.shape
    cdt = jnp.dtype(compute_dtype)
    isz = cdt.itemsize

    d_model_p = _round_up(d_model, LANE_ALIGN)
    limit_cap, budget = _vmem_caps()
    tm, tff, d_ff_p = _select_tiles(d_model_p, d_ff, isz, token_tile, ff_tile, budget)

    w1p = jnp.pad(w1.astype(cdt), ((0, d_model_p - d_model), (0, d_ff_p - d_ff)))
    w2p = jnp.pad(w2.astype(cdt), ((0, d_ff_p - d_ff), (0, d_model_p - d_model)))
    b1p = jnp.pad(b1.astype(jnp.float32), (0, d_ff_p - d_ff)).reshape(1, d_ff_p)
    b2p = jnp.pad(b2.astype(jnp.float32), (0, d_model_p - d_model)).reshape(1, d_model_p)

    vmem_limit = _footprint_bytes(tm, tff, d_model_p, isz) + (4 << 20)
    vmem_limit = min(max(vmem_limit, 32 << 20), limit_cap)

    return dict(w1=w1p, b1=b1p, w2=w2p, b2=b2p,
                d_model=d_model, d_ff=d_ff, d_model_p=d_model_p, d_ff_p=d_ff_p,
                tm=tm, tff=tff, compute_dtype=cdt, vmem_limit=int(vmem_limit))


def ffn_apply(params, x):
    """x: (..., d_model) -> (..., d_model)."""
    d_model = params["d_model"]
    d_ff = params["d_ff"]
    d_model_p = params["d_model_p"]
    d_ff_p = params["d_ff_p"]
    tff = params["tff"]
    cdt = params["compute_dtype"]
    out_dtype = x.dtype

    lead_shape = x.shape[:-1]
    n_tok = 1
    for s in lead_shape:
        n_tok *= s

    # Keep the prepared token tile, but shrink it for small batches so the
    # parallel axis still gets >= 2 tiles when possible (v7x dual-TC), never
    # going below 128 rows (keeps the MXU M dimension fed).
    tm = min(params["tm"],
             max(TOKEN_ALIGN, _round_up((n_tok + 1) // 2, TOKEN_ALIGN)))
    n_tok_p = _round_up(max(n_tok, 1), tm)

    x2 = x.reshape(n_tok, d_model).astype(cdt)
    x2 = jnp.pad(x2, ((0, n_tok_p - n_tok), (0, d_model_p - d_model)))

    grid = (n_tok_p // tm, d_ff_p // tff)
    use_scratch = out_dtype != jnp.float32
    kernel = _ffn_kernel_scratch_acc if use_scratch else _ffn_kernel_out_acc
    scratch = [pltpu.VMEM((tm, d_model_p), jnp.float32)] if use_scratch else []

    isz = cdt.itemsize
    cost = pl.CostEstimate(
        flops=4 * n_tok * d_model * d_ff,
        transcendentals=0,
        bytes_accessed=(x2.size * isz
                        + params["w1"].size * isz + params["w2"].size * isz
                        + params["b1"].size * 4 + params["b2"].size * 4
                        + n_tok_p * d_model_p * jnp.dtype(out_dtype).itemsize))

    out2 = pl.pallas_call(
        kernel,
        out_shape=jax.ShapeDtypeStruct((n_tok_p, d_model_p), out_dtype),
        grid_spec=pltpu.PrefetchScalarGridSpec(
            num_scalar_prefetch=0,
            grid=grid,
            in_specs=[
                pl.BlockSpec((tm, d_model_p), lambda i, k: (i, 0)),    # x tile
                pl.BlockSpec((d_model_p, tff), lambda i, k: (0, k)),   # W1 chunk
                pl.BlockSpec((1, tff),         lambda i, k: (0, k)),   # b1 chunk
                pl.BlockSpec((tff, d_model_p), lambda i, k: (k, 0)),   # W2 chunk
                pl.BlockSpec((1, d_model_p),   lambda i, k: (0, 0)),   # b2
            ],
            out_specs=pl.BlockSpec((tm, d_model_p), lambda i, k: (i, 0)),
            scratch_shapes=scratch),
        compiler_params=pltpu.CompilerParams(
            dimension_semantics=("parallel", "arbitrary"),
            vmem_limit_bytes=params["vmem_limit"]),
        cost_estimate=cost,
    )(x2, params["w1"], params["b1"], params["w2"], params["b2"])

    return out2[:n_tok, :d_model].reshape(*lead_shape, d_model)


def feed_forward_network(x, w1, b1, w2, b2, *, compute_dtype=jnp.bfloat16,
                         token_tile=512, ff_tile=None):
    """Convenience one-shot wrapper (prefer prepare_ffn_params + ffn_apply)."""
    params = prepare_ffn_params(w1, b1, w2, b2, compute_dtype=compute_dtype,
                                token_tile=token_tile, ff_tile=ff_tile)
    return ffn_apply(params, x)


# ------------------------------ init / reference ----------------------------

def init_params(key, d_model, d_ff, dtype=jnp.float32):
    """nn.Linear-style init: U(-1/sqrt(fan_in), 1/sqrt(fan_in)), stored [in, out]."""
    k1, k2, k3, k4 = jax.random.split(key, 4)
    lim1 = 1.0 / (d_model ** 0.5)
    lim2 = 1.0 / (d_ff ** 0.5)
    w1 = jax.random.uniform(k1, (d_model, d_ff), dtype, -lim1, lim1)
    b1 = jax.random.uniform(k2, (d_ff,), dtype, -lim1, lim1)
    w2 = jax.random.uniform(k3, (d_ff, d_model), dtype, -lim2, lim2)
    b2 = jax.random.uniform(k4, (d_model,), dtype, -lim2, lim2)
    return w1, b1, w2, b2


def _ref_ffn(x, w1, b1, w2, b2):
    return jnp.maximum(x @ w1 + b1, 0.0) @ w2 + b2


if __name__ == "__main__":
    key = jax.random.PRNGKey(0)

    # ---- Test 1: small shapes, f32 compute, full weight residency ----------
    batch, seq, d_model, d_ff = 2, 8, 32, 64
    kx, kp, krest = jax.random.split(key, 3)
    x = jax.random.normal(kx, (batch, seq, d_model), jnp.float32)
    w1, b1, w2, b2 = init_params(kp, d_model, d_ff)
    params = prepare_ffn_params(w1, b1, w2, b2, compute_dtype=jnp.float32)
    out = jax.block_until_ready(ffn_apply(params, x))
    ref = _ref_ffn(x, w1, b1, w2, b2)
    assert out.shape == (batch, seq, d_model)
    assert jnp.allclose(out, ref, atol=1e-5, rtol=1e-5)

    # ---- Test 2: bf16 compute, f32 output, grid = (2 token tiles, 2 ff chunks)
    #      exercises the accumulate-into-output path across the ff axis -------
    b2_, s2_, dm2, dff2 = 4, 64, 128, 512
    kx2, kp2, _ = jax.random.split(krest, 3)
    x_big = jax.random.normal(kx2, (b2_, s2_, dm2), jnp.float32)
    p_big = init_params(kp2, dm2, dff2)
    out_big = jax.block_until_ready(
        feed_forward_network(x_big, *p_big, compute_dtype=jnp.bfloat16,
                             token_tile=128, ff_tile=256))
    ref_big = _ref_ffn(x_big, *p_big)
    assert jnp.allclose(out_big, ref_big, atol=3e-2, rtol=3e-2)

    # ---- Test 3: bf16 input/output -> f32 scratch-accumulator path ----------
    out_bf = jax.block_until_ready(
        feed_forward_network(x_big.astype(jnp.bfloat16), *p_big,
                             compute_dtype=jnp.bfloat16,
                             token_tile=256, ff_tile=256))
    assert out_bf.dtype == jnp.bfloat16
    assert jnp.allclose(out_bf.astype(jnp.float32), ref_big, atol=6e-2, rtol=6e-2)

    print("KERNEL_OK")
</pallas_src>

<mosaic_0001>
module attributes {stable_mosaic.version = 11 : i64} {
  func.func @_ffn_kernel_out_acc(%arg0: i32, %arg1: i32, %arg2: memref<128x256xf32, #tpu.memory_space<vmem>>, %arg3: memref<256x256xf32, #tpu.memory_space<vmem>>, %arg4: memref<1x256xf32, #tpu.memory_space<vmem>>, %arg5: memref<256x256xf32, #tpu.memory_space<vmem>>, %arg6: memref<1x256xf32, #tpu.memory_space<vmem>>, %arg7: memref<128x256xf32, #tpu.memory_space<vmem>>) attributes {dimension_semantics = [#tpu.dimension_semantics<parallel>, #tpu.dimension_semantics<arbitrary>], iteration_bounds = array<i64: 1, 1>, scalar_prefetch = 0 : i64, scratch_operands = 0 : i64, tpu.core_type = #tpu.core_type<tc>, window_params = [{transform_indices = @transform_0, window_bounds = array<i64: 128, 256>}, {transform_indices = @transform_1, window_bounds = array<i64: 256, 256>}, {transform_indices = @transform_2, window_bounds = array<i64: 1, 256>}, {transform_indices = @transform_3, window_bounds = array<i64: 256, 256>}, {pipeline_mode = #tpu.pipeline_mode<synchronous>, transform_indices = @transform_4, window_bounds = array<i64: 1, 256>}, {transform_indices = @transform_5, window_bounds = array<i64: 128, 256>}]} {
    %c0_i32 = arith.constant 0 : i32
    %0 = arith.cmpi eq, %arg1, %c0_i32 : i32
    %1 = arith.extui %0 : i1 to i32
    %c0_i32_0 = arith.constant 0 : i32
    %2 = arith.cmpi ne, %1, %c0_i32_0 : i32
    scf.if %2 {
      %c0_14 = arith.constant 0 : index
      %c0_15 = arith.constant 0 : index
      %16 = vector.load %arg6[%c0_14, %c0_15] : memref<1x256xf32, #tpu.memory_space<vmem>>, vector<1x256xf32>
      %17 = vector.shape_cast %16 : vector<1x256xf32> to vector<1x256xf32>
      %18 = vector.broadcast %17 : vector<1x256xf32> to vector<128x256xf32>
      %c0_16 = arith.constant 0 : index
      %c0_17 = arith.constant 0 : index
      %19 = vector.load %arg7[%c0_16, %c0_17] : memref<128x256xf32, #tpu.memory_space<vmem>>, vector<128x256xf32>
      tpu.vector_store %arg7[%c0_16, %c0_17], %18 {strides = array<i32>} : memref<128x256xf32, #tpu.memory_space<vmem>>, vector<128x256xf32>,
    } else {
    }
    %c0 = arith.constant 0 : index
    %c0_1 = arith.constant 0 : index
    %3 = vector.load %arg2[%c0, %c0_1] : memref<128x256xf32, #tpu.memory_space<vmem>>, vector<128x256xf32>
    %c0_2 = arith.constant 0 : index
    %c0_3 = arith.constant 0 : index
    %4 = vector.load %arg3[%c0_2, %c0_3] : memref<256x256xf32, #tpu.memory_space<vmem>>, vector<256x256xf32>
    %cst = arith.constant dense<0.000000e+00> : vector<128x256xf32>
    %5 = tpu.matmul %3, %4, %cst {dimension_numbers = #tpu.dot_dimension_numbers<[1], [0], [0], [1], [0, 0, 1, 1], [], []>} : vector<128x256xf32>, vector<256x256xf32>, vector<128x256xf32> -> vector<128x256xf32>
    %c0_4 = arith.constant 0 : index
    %c0_5 = arith.constant 0 : index
    %6 = vector.load %arg4[%c0_4, %c0_5] : memref<1x256xf32, #tpu.memory_space<vmem>>, vector<1x256xf32>
    %7 = vector.broadcast %6 : vector<1x256xf32> to vector<128x256xf32>
    %8 = arith.addf %5, %7 : vector<128x256xf32>
    %cst_6 = arith.constant 0.000000e+00 : f32
    %9 = vector.broadcast %cst_6 : f32 to vector<128x256xf32>
    %10 = arith.maximumf %8, %9 : vector<128x256xf32>
    %c0_7 = arith.constant 0 : index
    %c0_8 = arith.constant 0 : index
    %11 = vector.load %arg7[%c0_7, %c0_8] : memref<128x256xf32, #tpu.memory_space<vmem>>, vector<128x256xf32>
    %c0_9 = arith.constant 0 : index
    %c0_10 = arith.constant 0 : index
    %12 = vector.load %arg5[%c0_9, %c0_10] : memref<256x256xf32, #tpu.memory_space<vmem>>, vector<256x256xf32>
    %cst_11 = arith.constant dense<0.000000e+00> : vector<128x256xf32>
    %13 = tpu.matmul %10, %12, %cst_11 {dimension_numbers = #tpu.dot_dimension_numbers<[1], [0], [0], [1], [0, 0, 1, 1], [], []>} : vector<128x256xf32>, vector<256x256xf32>, vector<128x256xf32> -> vector<128x256xf32>
    %14 = arith.addf %11, %13 : vector<128x256xf32>
    %c0_12 = arith.constant 0 : index
    %c0_13 = arith.constant 0 : index
    %15 = vector.load %arg7[%c0_12, %c0_13] : memref<128x256xf32, #tpu.memory_space<vmem>>, vector<128x256xf32>
    tpu.vector_store %arg7[%c0_12, %c0_13], %14 {strides = array<i32>} : memref<128x256xf32, #tpu.memory_space<vmem>>, vector<128x256xf32>,
    return
  }
  func.func @transform_0(%arg0: i32, %arg1: i32) -> (i32, i32) {
    %c0_i32 = arith.constant 0 : i32
    %c0_i32_0 = arith.constant 0 : i32
    return %arg0, %c0_i32 : i32, i32
  }
  func.func @transform_1(%arg0: i32, %arg1: i32) -> (i32, i32) {
    %c0_i32 = arith.constant 0 : i32
    %c0_i32_0 = arith.constant 0 : i32
    return %c0_i32, %arg1 : i32, i32
  }
  func.func @transform_2(%arg0: i32, %arg1: i32) -> (i32, i32) {
    %c0_i32 = arith.constant 0 : i32
    %c0_i32_0 = arith.constant 0 : i32
    return %c0_i32, %arg1 : i32, i32
  }
  func.func @transform_3(%arg0: i32, %arg1: i32) -> (i32, i32) {
    %c0_i32 = arith.constant 0 : i32
    %c0_i32_0 = arith.constant 0 : i32
    return %arg1, %c0_i32 : i32, i32
  }
  func.func @transform_4(%arg0: i32, %arg1: i32) -> (i32, i32) {
    %c0_i32 = arith.constant 0 : i32
    %c0_i32_0 = arith.constant 0 : i32
    %c0_i32_1 = arith.constant 0 : i32
    return %c0_i32, %c0_i32_0 : i32, i32
  }
  func.func @transform_5(%arg0: i32, %arg1: i32) -> (i32, i32) {
    %c0_i32 = arith.constant 0 : i32
    %c0_i32_0 = arith.constant 0 : i32
    return %arg0, %c0_i32 : i32, i32
  }
}

</mosaic_0001>

<bundles_post_ra>
// kernel: tpu_custom_call.1
= control target key start
LH: loop header
LB: loop body
LE: loop exit
PB: predicated region body
PF: predicated region fallthrough
CT: control target
= control target key end

     0   :  { %10 = vsyncpa [#allocation3], 0  ;;  %s1171_s0 = inlined_call_operand.hbm [shape: f32[128,256], index: 0, kind: input, shape index: {}]   ;;  %s1172_s1 = inlined_call_operand.hbm [shape: f32[256,256], index: 1, kind: input, shape index: {}]   ;;  %s1173_s2 = inlined_call_operand.vmem [shape: f32[1,256], index: 2, kind: input, shape index: {}]   ;;  %s1174_s3 = inlined_call_operand.hbm [shape: f32[256,256], index: 3, kind: input, shape index: {}]   ;;  %s1175_s4 = inlined_call_operand.vmem [shape: f32[1,256], index: 4, kind: input, shape index: {}]   ;;  %s1176_s5 = inlined_call_operand.hbm [shape: f32[128,256], index: 5, kind: output, shape index: {}]  }
   0x1   :  { %11 = vsyncpa [#allocation6], 0 }
   0x2   :  { %12 = vsyncpa [#allocation4], 0  ;;  %s978_s18 = smov [#allocation5]   ;;  %s979_s20 = smov [#allocation2]  }
   0x3   :  { %s30_s19 = sshll.u32 %s978_s18, 4  ;;  %s18_s21 = sshll.u32 %s979_s20, 4  ;;  %s31_s19 = int_to_ptr.vmem [resolvable:$true] %s30_s19  ;;  %s1014_s21 = int_to_ptr.vmem [resolvable:$true] %s18_s21 }
   0x4   :  { %s884_s24 = scalar_lea.hbm %s1172_s1, 8192 }
   0x5   :  { %p885_p0 = scmp.ne.s32.totalorder %s1172_s1, %s884_s24  ;;  %p888_p1 = scmp.lt.u32.totalorder %s884_s24, %s1172_s1 }
   0x7   :  { %p890_p2 = pnand %p888_p1, %p885_p0 }
   0x9   :  { %893 = shalt.err (!%p890_p2)
}
   0xa   :  { %s894_s29 = scalar_lea.vmem %s31_s19, 8192  ;;  %p899_p4 = scmp.lt.s32.totalorder %s31_s19, %s31_s19 }
   0xb   :  { %p895_p3 = scmp.ne.s32.totalorder %s31_s19, %s894_s29  ;;  %p900_p5 = scmp.lt.s32.totalorder %s894_s29, %s894_s29 }
   0xd   :  { %p901_p6 = por %p900_p5, %p899_p4 }
   0xf   :  { %p902_p7 = pnand %p901_p6, %p895_p3 }
  0x11   :  { %905 = shalt.err (!%p902_p7)
}
  0x12   :  { %s980_s30 = smov 256   ;;  %s981_s6 = smov 16  }
  0x13   :  { %36 = dma.hbm_to_vmem [thread:$0]  %s1172_s1, 8192, %s31_s19, [#allocation6], %s980_s30, %s980_s30, %s981_s6  }
  0x14   :  { %s906_s11 = scalar_lea.hbm %s1171_s0, 4096 }
  0x15   :  { %p907_p8 = scmp.ne.s32.totalorder %s1171_s0, %s906_s11  ;;  %p910_p9 = scmp.lt.u32.totalorder %s906_s11, %s1171_s0 }
  0x17   :  { %p912_p10 = pnand %p910_p9, %p907_p8 }
  0x19   :  { %915 = shalt.err (!%p912_p10)
}
  0x1a   :  { %s916_s16 = scalar_lea.vmem %s1014_s21, 4096  ;;  %p921_p12 = scmp.lt.s32.totalorder %s1014_s21, %s1014_s21 }
  0x1b   :  { %p917_p11 = scmp.ne.s32.totalorder %s1014_s21, %s916_s16  ;;  %p922_p13 = scmp.lt.s32.totalorder %s916_s16, %s916_s16 }
  0x1d   :  { %p923_p0 = por %p922_p13, %p921_p12 }
  0x1f   :  { %p924_p1 = pnand %p923_p0, %p917_p11 }
  0x21   :  { %927 = shalt.err (!%p924_p1)
}
  0x22   :  { %24 = dma.hbm_to_vmem [thread:$0]  %s1171_s0, 4096, %s1014_s21, [#allocation3], %s980_s30, %s980_s30, %s981_s6  }
  0x23   :  { %s982_s18 = smov [#allocation7]   ;;  %s928_s23 = scalar_lea.hbm %s1174_s3, 8192 }
  0x24   :  { %s44_s19 = sshll.u32 %s982_s18, 4  ;;  %p929_p2 = scmp.ne.s32.totalorder %s1174_s3, %s928_s23  ;;  %s45_s19 = int_to_ptr.vmem [resolvable:$true] %s44_s19 }
  0x25   :  { %p932_p3 = scmp.lt.u32.totalorder %s928_s23, %s1174_s3 }
  0x27   :  { %p934_p4 = pnand %p932_p3, %p929_p2 }
  0x29   :  { %937 = shalt.err (!%p934_p4)
}
  0x2a   :  { %s938_s28 = scalar_lea.vmem %s45_s19, 8192  ;;  %p943_p6 = scmp.lt.s32.totalorder %s45_s19, %s45_s19 }
  0x2b   :  { %p939_p5 = scmp.ne.s32.totalorder %s45_s19, %s938_s28  ;;  %p944_p7 = scmp.lt.s32.totalorder %s938_s28, %s938_s28 }
  0x2d   :  { %p945_p8 = por %p944_p7, %p943_p6 }
  0x2f   :  { %p946_p9 = pnand %p945_p8, %p939_p5 }
  0x31   :  { %949 = shalt.err (!%p946_p9)
}
  0x32   :  { %50 = dma.hbm_to_vmem [thread:$0]  %s1174_s3, 8192, %s45_s19, [#allocation6], %s980_s30, %s980_s30, %s981_s6  }
  0x33   :  { %972 = dma.done.wait [#allocation3], 4096  }
  0x34   :  { %973 = vsyncadd [#allocation3], 4294963200 }
  0x35   :  { %974 = dma.done.wait [#allocation6], 16384  }
  0x36   :  { %975 = vsyncadd [#allocation6], 4294950912  ;;  %v143_v0 = vld [vmem:[#allocation5 + $0x8] sm:$0xff]  ;;  %v145_v1 = vld [vmem:[#allocation5 + $0x18] sm:$0xff] }
  0x37   :  { %v142_v2 = vld [vmem:[#allocation5] sm:$0xff]  ;;  %v750_v3 = vpack.c.bf16 %v145_v1, %v143_v0  ;;  %v144_v4 = vld [vmem:[#allocation5 + $0x10] sm:$0xff]  ;;  %v147_v5 = vld [vmem:[#allocation5 + $0x28] sm:$0xff] }
  0x38   :  { %v149_v6 = vld [vmem:[#allocation5 + $0x38] sm:$0xff]  ;;  %v752_v7 = vpack.c.bf16 %v144_v4, %v142_v2  ;;  %v146_v9 = vld [vmem:[#allocation5 + $0x20] sm:$0xff]  ;;  %v148_v10 = vld [vmem:[#allocation5 + $0x30] sm:$0xff] }
  0x39   :  { %v754_v8 = vpack.c.bf16 %v149_v6, %v147_v5  ;;  %v151_v11 = vld [vmem:[#allocation5 + $0x48] sm:$0xff]  ;;  %751 = vmatprep.subr.bf16.mxu0 %v750_v3  ;;  %v153_v12 = vld [vmem:[#allocation5 + $0x58] sm:$0xff]  ;;  %v756_v13 = vpack.c.bf16 %v148_v10, %v146_v9  ;;  %v150_v15 = vld [vmem:[#allocation5 + $0x40] sm:$0xff] }
  0x3a   :  { %753 = vmatpush1.bf16.msra.mxu0 %v752_v7  ;;  %v758_v14 = vpack.c.bf16 %v153_v12, %v151_v11  ;;  %v152_v16 = vld [vmem:[#allocation5 + $0x50] sm:$0xff]  ;;  %v155_v17 = vld [vmem:[#allocation5 + $0x68] sm:$0xff]  ;;  %v157_v18 = vld [vmem:[#allocation5 + $0x78] sm:$0xff] }
  0x3b   :  { %755 = vmatprep.subr.bf16.mxu0 %v754_v8  ;;  %v760_v19 = vpack.c.bf16 %v152_v16, %v150_v15  ;;  %v762_v20 = vpack.c.bf16 %v157_v18, %v155_v17  ;;  %v154_v21 = vld [vmem:[#allocation5 + $0x60] sm:$0xff]  ;;  %v156_v22 = vld [vmem:[#allocation5 + $0x70] sm:$0xff]  ;;  %v159_v23 = vld [vmem:[#allocation5 + $0x88] sm:$0xff] }
  0x3c   :  { %v161_v24 = vld [vmem:[#allocation5 + $0x98] sm:$0xff]  ;;  %v764_v25 = vpack.c.bf16 %v156_v22, %v154_v21  ;;  %v158_v27 = vld [vmem:[#allocation5 + $0x80] sm:$0xff]  ;;  %v160_v28 = vld [vmem:[#allocation5 + $0x90] sm:$0xff] }
  0x3d   :  { %v766_v26 = vpack.c.bf16 %v161_v24, %v159_v23  ;;  %v163_v29 = vld [vmem:[#allocation5 + $0xa8] sm:$0xff]  ;;  %v165_v30 = vld [vmem:[#allocation5 + $0xb8] sm:$0xff]  ;;  %v768_v31 = vpack.c.bf16 %v160_v28, %v158_v27  ;;  %v162_v33 = vld [vmem:[#allocation5 + $0xa0] sm:$0xff] }
  0x3e   :  { %757 = vmatpush1.bf16.msra.mxu0 %v756_v13  ;;  %v770_v32 = vpack.c.bf16 %v165_v30, %v163_v29  ;;  %v164_v34 = vld [vmem:[#allocation5 + $0xb0] sm:$0xff]  ;;  %v167_v35 = vld [vmem:[#allocation5 + $0xc8] sm:$0xff]  ;;  %v169_v36 = vld [vmem:[#allocation5 + $0xd8] sm:$0xff] }
  0x3f   :  { %759 = vmatprep.subr.bf16.mxu0 %v758_v14  ;;  %v772_v37 = vpack.c.bf16 %v164_v34, %v162_v33  ;;  %v774_v38 = vpack.c.bf16 %v169_v36, %v167_v35  ;;  %v166_v39 = vld [vmem:[#allocation5 + $0xc0] sm:$0xff]  ;;  %v168_v40 = vld [vmem:[#allocation5 + $0xd0] sm:$0xff]  ;;  %v111_v41 = vld [vmem:[#allocation2 + $0x8] sm:$0xff] }
  0x40   :  { %v171_v42 = vld [vmem:[#allocation5 + $0xe8] sm:$0xff]  ;;  %v173_v43 = vld [vmem:[#allocation5 + $0xf8] sm:$0xff]  ;;  %282 = vmatprep.mubr.f32.mxu0 %v111_v41  ;;  %v776_v44 = vpack.c.bf16 %v168_v40, %v166_v39  ;;  %v170_v46 = vld [vmem:[#allocation5 + $0xe0] sm:$0xff] }
  0x41   :  { %v778_v45 = vpack.c.bf16 %v173_v43, %v171_v42  ;;  %v172_v47 = vld [vmem:[#allocation5 + $0xf0] sm:$0xff]  ;;  %v175_v48 = vld [vmem:[#allocation5 + $0x108] sm:$0xff]  ;;  %v177_v49 = vld [vmem:[#allocation5 + $0x118] sm:$0xff] }
  0x42   :  { %761 = vmatpush1.bf16.msra.mxu0 %v760_v19  ;;  %v780_v50 = vpack.c.bf16 %v172_v47, %v170_v46  ;;  %v782_v51 = vpack.c.bf16 %v177_v49, %v175_v48  ;;  %v174_v52 = vld [vmem:[#allocation5 + $0x100] sm:$0xff]  ;;  %v176_v53 = vld [vmem:[#allocation5 + $0x110] sm:$0xff]  ;;  %v179_v54 = vld [vmem:[#allocation5 + $0x128] sm:$0xff] }
  0x43   :  { %763 = vmatprep.subr.bf16.mxu0 %v762_v20  ;;  %v181_v55 = vld [vmem:[#allocation5 + $0x138] sm:$0xff]  ;;  %v178_v56 = vld [vmem:[#allocation5 + $0x120] sm:$0xff]  ;;  %v180_v57 = vld [vmem:[#allocation5 + $0x130] sm:$0xff]  ;;  %v784_v58 = vpack.c.bf16 %v176_v53, %v174_v52 }
  0x44   :  { %v183_v59 = vld [vmem:[#allocation5 + $0x148] sm:$0xff]  ;;  %v185_v60 = vld [vmem:[#allocation5 + $0x158] sm:$0xff]  ;;  %v443_v63 = vld [vmem:[#allocation7] sm:$0xff]  ;;  %v786_v0 = vpack.c.bf16 %v181_v55, %v179_v54  ;;  %v788_v11 = vpack.c.bf16 %v180_v57, %v178_v56 }
  0x45   :  { %v444_v61 = vld [vmem:[#allocation7 + $0x8] sm:$0xff]  ;;  %v446_v62 = vld [vmem:[#allocation7 + $0x18] sm:$0xff]  ;;  %v445_v2 = vld [vmem:[#allocation7 + $0x10] sm:$0xff]  ;;  %v790_v15 = vpack.c.bf16 %v185_v60, %v183_v59 }
  0x46   :  { %765 = vmatpush1.bf16.msra.mxu0 %v764_v25  ;;  %v814_v1 = vpack.c.bf16 %v446_v62, %v444_v61  ;;  %v448_v3 = vld [vmem:[#allocation7 + $0x28] sm:$0xff]  ;;  %v450_v4 = vld [vmem:[#allocation7 + $0x38] sm:$0xff]  ;;  %v816_v5 = vpack.c.bf16 %v445_v2, %v443_v63  ;;  %v447_v7 = vld [vmem:[#allocation7 + $0x20] sm:$0xff] }
  0x47   :  { %767 = vmatprep.subr.bf16.mxu0 %v766_v26  ;;  %v818_v6 = vpack.c.bf16 %v450_v4, %v448_v3  ;;  %v449_v8 = vld [vmem:[#allocation7 + $0x30] sm:$0xff]  ;;  %v452_v9 = vld [vmem:[#allocation7 + $0x48] sm:$0xff]  ;;  %v454_v10 = vld [vmem:[#allocation7 + $0x58] sm:$0xff] }
  0x48   :  { %815 = vmatprep.subr.bf16.mxu1 %v814_v1  ;;  %v182_v12 = vld [vmem:[#allocation5 + $0x140] sm:$0xff]  ;;  %v184_v13 = vld [vmem:[#allocation5 + $0x150] sm:$0xff]  ;;  %v820_v14 = vpack.c.bf16 %v449_v8, %v447_v7  ;;  %v187_v16 = vld [vmem:[#allocation5 + $0x168] sm:$0xff]  ;;  %v822_v17 = vpack.c.bf16 %v454_v10, %v452_v9 }
  0x49   :  { %817 = vmatpush1.bf16.msra.mxu1 %v816_v5  ;;  %v451_v18 = vld [vmem:[#allocation7 + $0x40] sm:$0xff]  ;;  %v453_v19 = vld [vmem:[#allocation7 + $0x50] sm:$0xff]  ;;  %v189_v20 = vld [vmem:[#allocation5 + $0x178] sm:$0xff]  ;;  %v792_v23 = vpack.c.bf16 %v184_v13, %v182_v12 }
  0x4a   :  { %769 = vmatpush1.bf16.msra.mxu0 %v768_v31  ;;  %819 = vmatprep.subr.bf16.mxu1 %v818_v6  ;;  %v456_v21 = vld [vmem:[#allocation7 + $0x68] sm:$0xff]  ;;  %v458_v22 = vld [vmem:[#allocation7 + $0x78] sm:$0xff]  ;;  %v186_v24 = vld [vmem:[#allocation5 + $0x160] sm:$0xff]  ;;  %v824_v26 = vpack.c.bf16 %v453_v19, %v451_v18  ;;  %v794_v27 = vpack.c.bf16 %v189_v20, %v187_v16 }
  0x4b   :  { %771 = vmatprep.subr.bf16.mxu0 %v770_v32  ;;  %v188_v25 = vld [vmem:[#allocation5 + $0x170] sm:$0xff]  ;;  %v191_v28 = vld [vmem:[#allocation5 + $0x188] sm:$0xff]  ;;  %v826_v29 = vpack.c.bf16 %v458_v22, %v456_v21  ;;  %v455_v30 = vld [vmem:[#allocation7 + $0x60] sm:$0xff] }
  0x4c   :  { %v457_v31 = vld [vmem:[#allocation7 + $0x70] sm:$0xff]  ;;  %v193_v32 = vld [vmem:[#allocation5 + $0x198] sm:$0xff]  ;;  %v460_v33 = vld [vmem:[#allocation7 + $0x88] sm:$0xff]  ;;  %v796_v35 = vpack.c.bf16 %v188_v25, %v186_v24 }
  0x4d   :  { %821 = vmatpush1.bf16.msra.mxu1 %v820_v14  ;;  %v462_v34 = vld [vmem:[#allocation7 + $0x98] sm:$0xff]  ;;  %v190_v36 = vld [vmem:[#allocation5 + $0x180] sm:$0xff]  ;;  %v798_v39 = vpack.c.bf16 %v193_v32, %v191_v28  ;;  %v195_v40 = vld [vmem:[#allocation5 + $0x1a8] sm:$0xff] }
  0x4e   :  { %773 = vmatpush1.bf16.msra.mxu0 %v772_v37  ;;  %823 = vmatprep.subr.bf16.mxu1 %v822_v17  ;;  %v192_v37 = vld [vmem:[#allocation5 + $0x190] sm:$0xff]  ;;  %v830_v41 = vpack.c.bf16 %v462_v34, %v460_v33  ;;  %v459_v42 = vld [vmem:[#allocation7 + $0x80] sm:$0xff]  ;;  %v466_v46 = vld [vmem:[#allocation7 + $0xb8] sm:$0xff] }
  0x4f   :  { %775 = vmatprep.subr.bf16.mxu0 %v774_v38  ;;  %v828_v38 = vpack.c.bf16 %v457_v31, %v455_v30  ;;  %v461_v43 = vld [vmem:[#allocation7 + $0x90] sm:$0xff]  ;;  %v800_v47 = vpack.c.bf16 %v192_v37, %v190_v36  ;;  %v194_v48 = vld [vmem:[#allocation5 + $0x1a0] sm:$0xff]  ;;  %v199_v52 = vld [vmem:[#allocation5 + $0x1c8] sm:$0xff] }
  0x50   :  { %v196_v49 = vld [vmem:[#allocation5 + $0x1b0] sm:$0xff]  ;;  %v463_v54 = vld [vmem:[#allocation7 + $0xa0] sm:$0xff]  ;;  %v201_v56 = vld [vmem:[#allocation5 + $0x1d8] sm:$0xff] }
  0x51   :  { %825 = vmatpush1.bf16.msra.mxu1 %v824_v26  ;;  %v465_v55 = vld [vmem:[#allocation7 + $0xb0] sm:$0xff]  ;;  %v468_v57 = vld [vmem:[#allocation7 + $0xc8] sm:$0xff]  ;;  %v804_v59 = vpack.c.bf16 %v196_v49, %v194_v48  ;;  %v198_v60 = vld [vmem:[#allocation5 + $0x1c0] sm:$0xff]  ;;  %v806_v63 = vpack.c.bf16 %v201_v56, %v199_v52 }
  0x52   :  { %777 = vmatpush1.bf16.msra.mxu0 %v776_v44  ;;  %827 = vmatprep.subr.bf16.mxu1 %v826_v29  ;;  %v197_v44 = vld [vmem:[#allocation5 + $0x1b8] sm:$0xff]  ;;  %v200_v61 = vld [vmem:[#allocation5 + $0x1d0] sm:$0xff]  ;;  %v836_v62 = vpack.c.bf16 %v465_v55, %v463_v54  ;;  %v467_v2 = vld [vmem:[#allocation7 + $0xc0] sm:$0xff] }
  0x53   :  { %779 = vmatprep.subr.bf16.mxu0 %v778_v45  ;;  %v464_v45 = vld [vmem:[#allocation7 + $0xa8] sm:$0xff]  ;;  %v469_v3 = vld [vmem:[#allocation7 + $0xd0] sm:$0xff]  ;;  %v205_v4 = vld [vmem:[#allocation5 + $0x1f8] sm:$0xff]  ;;  %v808_v7 = vpack.c.bf16 %v200_v61, %v198_v60 }
  0x54   :  { %v834_v53 = vpack.c.bf16 %v466_v46, %v464_v45  ;;  %v472_v5 = vld [vmem:[#allocation7 + $0xe8] sm:$0xff]  ;;  %v474_v6 = vld [vmem:[#allocation7 + $0xf8] sm:$0xff]  ;;  %v202_v8 = vld [vmem:[#allocation5 + $0x1e0] sm:$0xff]  ;;  %v840_v9 = vpack.c.bf16 %v469_v3, %v467_v2 }
  0x55   :  { %829 = vmatpush1.bf16.msra.mxu1 %v828_v38  ;;  %v842_v12 = vpack.c.bf16 %v474_v6, %v472_v5  ;;  %v471_v13 = vld [vmem:[#allocation7 + $0xe0] sm:$0xff]  ;;  %v473_v14 = vld [vmem:[#allocation7 + $0xf0] sm:$0xff]  ;;  %v478_v16 = vld [vmem:[#allocation7 + $0x118] sm:$0xff] }
  0x56   :  { %781 = vmatpush1.bf16.msra.mxu0 %v780_v50  ;;  %v832_v50 = vpack.c.bf16 %v461_v43, %v459_v42  ;;  %831 = vmatprep.subr.bf16.mxu1 %v830_v41  ;;  %v844_v18 = vpack.c.bf16 %v473_v14, %v471_v13  ;;  %v475_v20 = vld [vmem:[#allocation7 + $0x100] sm:$0xff]  ;;  %v477_v21 = vld [vmem:[#allocation7 + $0x110] sm:$0xff]  ;;  %v480_v22 = vld [vmem:[#allocation7 + $0x128] sm:$0xff] }
  0x57   :  { %783 = vmatprep.subr.bf16.mxu0 %v782_v51  ;;  %v802_v51 = vpack.c.bf16 %v197_v44, %v195_v40  ;;  %v110_v24 = vld [vmem:[#allocation2] sm:$0xff]  ;;  %v848_v25 = vpack.c.bf16 %v477_v21, %v475_v20  ;;  %v113_v26 = vld [vmem:[#allocation2 + $0x18] sm:$0xff]  ;;  %v481_v29 = vld [vmem:[#allocation7 + $0x130] sm:$0xff] }
  0x58   :  { %v479_v28 = vld [vmem:[#allocation7 + $0x120] sm:$0xff]  ;;  %v484_v30 = vld [vmem:[#allocation7 + $0x148] sm:$0xff]  ;;  %v486_v31 = vld [vmem:[#allocation7 + $0x158] sm:$0xff] }
  0x59   :  { %833 = vmatpush1.bf16.msra.mxu1 %v832_v50  ;;  %v112_v32 = vld [vmem:[#allocation2 + $0x10] sm:$0xff]  ;;  %v852_v33 = vpack.c.bf16 %v481_v29, %v479_v28  ;;  %v115_v34 = vld [vmem:[#allocation2 + $0x28] sm:$0xff]  ;;  %v483_v36 = vld [vmem:[#allocation7 + $0x140] sm:$0xff] }
  0x5a   :  { %785 = vmatpush1.bf16.msra.mxu0 %v784_v58  ;;  %v470_v58 = vld [vmem:[#allocation7 + $0xd8] sm:$0xff]  ;;  %835 = vmatprep.subr.bf16.mxu1 %v834_v53  ;;  %v485_v37 = vld [vmem:[#allocation7 + $0x150] sm:$0xff]  ;;  %v488_v38 = vld [vmem:[#allocation7 + $0x168] sm:$0xff] }
  0x5b   :  { %787 = vmatprep.subr.bf16.mxu0 %v786_v0  ;;  %v203_v0 = vld [vmem:[#allocation5 + $0x1e8] sm:$0xff]  ;;  %v838_v1 = vpack.c.bf16 %v470_v58, %v468_v57  ;;  %v114_v40 = vld [vmem:[#allocation2 + $0x20] sm:$0xff]  ;;  %v856_v41 = vpack.c.bf16 %v485_v37, %v483_v36  ;;  %v117_v42 = vld [vmem:[#allocation2 + $0x38] sm:$0xff] }
  0x5c   :  { %v810_v10 = vpack.c.bf16 %v205_v4, %v203_v0  ;;  %v487_v44 = vld [vmem:[#allocation7 + $0x160] sm:$0xff]  ;;  %v489_v45 = vld [vmem:[#allocation7 + $0x170] sm:$0xff]  ;;  %v492_v46 = vld [vmem:[#allocation7 + $0x188] sm:$0xff] }
  0x5d   :  { %837 = vmatpush1.bf16.msra.mxu1 %v836_v62  ;;  %v116_v48 = vld [vmem:[#allocation2 + $0x30] sm:$0xff]  ;;  %v860_v49 = vpack.c.bf16 %v489_v45, %v487_v44  ;;  %v119_v50 = vld [vmem:[#allocation2 + $0x48] sm:$0xff]  ;;  %v491_v52 = vld [vmem:[#allocation7 + $0x180] sm:$0xff] }
  0x5e   :  { %789 = vmatpush1.bf16.msra.mxu0 %v788_v11  ;;  %v204_v11 = vld [vmem:[#allocation5 + $0x1f0] sm:$0xff]  ;;  %839 = vmatprep.subr.bf16.mxu1 %v838_v1  ;;  %v496_v54 = vld [vmem:[#allocation7 + $0x1a8] sm:$0xff]  ;;  %v498_v55 = vld [vmem:[#allocation7 + $0x1b8] sm:$0xff] }
  0x5f   :  { %791 = vmatprep.subr.bf16.mxu0 %v790_v15  ;;  %v476_v15 = vld [vmem:[#allocation7 + $0x108] sm:$0xff]  ;;  %v812_v17 = vpack.c.bf16 %v204_v11, %v202_v8  ;;  %v493_v53 = vld [vmem:[#allocation7 + $0x190] sm:$0xff]  ;;  %v118_v56 = vld [vmem:[#allocation2 + $0x40] sm:$0xff] }
  0x60   :  { %v846_v19 = vpack.c.bf16 %v478_v16, %v476_v15  ;;  %v864_v57 = vpack.c.bf16 %v493_v53, %v491_v52  ;;  %v121_v58 = vld [vmem:[#allocation2 + $0x58] sm:$0xff]  ;;  %v495_v60 = vld [vmem:[#allocation7 + $0x1a0] sm:$0xff]  ;;  %v497_v61 = vld [vmem:[#allocation7 + $0x1b0] sm:$0xff] }
  0x61   :  { %841 = vmatpush1.bf16.msra.mxu1 %v840_v9  ;;  %v500_v62 = vld [vmem:[#allocation7 + $0x1c8] sm:$0xff]  ;;  %v120_v0 = vld [vmem:[#allocation2 + $0x50] sm:$0xff]  ;;  %v868_v1 = vpack.c.bf16 %v497_v61, %v495_v60  ;;  %v122_v4 = vld [vmem:[#allocation2 + $0x60] sm:$0xff] }
  0x62   :  { %793 = vmatpush1.bf16.msra.mxu0 %v792_v23  ;;  %843 = vmatprep.subr.bf16.mxu1 %v842_v12  ;;  %v482_v23 = vld [vmem:[#allocation7 + $0x138] sm:$0xff]  ;;  %v123_v2 = vld [vmem:[#allocation2 + $0x68] sm:$0xff]  ;;  %v124_v6 = vld [vmem:[#allocation2 + $0x70] sm:$0xff] }
  0x63   :  { %795 = vmatprep.subr.bf16.mxu0 %v794_v27  ;;  %v850_v27 = vpack.c.bf16 %v482_v23, %v480_v22  ;;  %v125_v5 = vld [vmem:[#allocation2 + $0x78] sm:$0xff]  ;;  %v126_v8 = vld [vmem:[#allocation2 + $0x80] sm:$0xff]  ;;  %v131_v11 = vld [vmem:[#allocation2 + $0xa8] sm:$0xff] }
  0x64   :  { %v129_v9 = vld [vmem:[#allocation2 + $0x98] sm:$0xff]  ;;  %v130_v12 = vld [vmem:[#allocation2 + $0xa0] sm:$0xff]  ;;  %v132_v14 = vld [vmem:[#allocation2 + $0xb0] sm:$0xff] }
  0x65   :  { %845 = vmatpush1.bf16.msra.mxu1 %v844_v18  ;;  %v133_v13 = vld [vmem:[#allocation2 + $0xb8] sm:$0xff]  ;;  %v135_v15 = vld [vmem:[#allocation2 + $0xc8] sm:$0xff]  ;;  %v134_v16 = vld [vmem:[#allocation2 + $0xc0] sm:$0xff] }
  0x66   :  { %797 = vmatpush1.bf16.msra.mxu0 %v796_v35  ;;  %847 = vmatprep.subr.bf16.mxu1 %v846_v19  ;;  %v854_v35 = vpack.c.bf16 %v486_v31, %v484_v30  ;;  %v136_v18 = vld [vmem:[#allocation2 + $0xd0] sm:$0xff]  ;;  %v139_v19 = vld [vmem:[#allocation2 + $0xe8] sm:$0xff]  ;;  %v138_v20 = vld [vmem:[#allocation2 + $0xe0] sm:$0xff] }
  0x67   :  { %799 = vmatprep.subr.bf16.mxu0 %v798_v39  ;;  %v490_v39 = vld [vmem:[#allocation7 + $0x178] sm:$0xff]  ;;  %v140_v22 = vld [vmem:[#allocation2 + $0xf0] sm:$0xff]  ;;  %v499_v23 = vld [vmem:[#allocation7 + $0x1c0] sm:$0xff] }
  0x68   :  { %v858_v43 = vpack.c.bf16 %v490_v39, %v488_v38  ;;  %v141_v21 = vld [vmem:[#allocation2 + $0xf8] sm:$0xff]  ;;  %v503_v29 = vld [vmem:[#allocation7 + $0x1e0] sm:$0xff]  ;;  %v505_v30 = vld [vmem:[#allocation7 + $0x1f0] sm:$0xff] }
  0x69   :  { %849 = vmatpush1.bf16.msra.mxu1 %v848_v25  ;;  %v876_v31 = vpack.c.bf16 %v505_v30, %v503_v29 }
  0x6a   :  { %801 = vmatpush1.bf16.msra.mxu0 %v800_v47  ;;  %851 = vmatprep.subr.bf16.mxu1 %v850_v27  ;;  %v494_v47 = vld [vmem:[#allocation7 + $0x198] sm:$0xff] }
  0x6b   :  { %803 = vmatprep.subr.bf16.mxu0 %v802_v51  ;;  %v862_v51 = vpack.c.bf16 %v494_v47, %v492_v46  ;;  %v506_v27 = vld [vmem:[#allocation7 + $0x1f8] sm:$0xff] }
  0x6d   :  { %853 = vmatpush1.bf16.msra.mxu1 %v852_v33 }
  0x6e   :  { %805 = vmatpush1.bf16.msra.mxu0 %v804_v59  ;;  %855 = vmatprep.subr.bf16.mxu1 %v854_v35  ;;  %v866_v59 = vpack.c.bf16 %v498_v55, %v496_v54  ;;  %v206_v35 = vld [vmem:[%s1173_s2] sm:$0x3] }
  0x6f   :  { %807 = vmatprep.subr.bf16.mxu0 %v806_v63  ;;  %v502_v63 = vld [vmem:[#allocation7 + $0x1d8] sm:$0xff] }
  0x70   :  { %v870_v3 = vpack.c.bf16 %v502_v63, %v500_v62 }
  0x71   :  { %857 = vmatpush1.bf16.msra.mxu1 %v856_v41 }
  0x72   :  { %809 = vmatpush1.bf16.msra.mxu0 %v808_v7  ;;  %859 = vmatprep.subr.bf16.mxu1 %v858_v43  ;;  %v127_v7 = vld [vmem:[#allocation2 + $0x88] sm:$0xff] }
  0x73   :  { %811 = vmatprep.subr.bf16.mxu0 %v810_v10  ;;  %v128_v10 = vld [vmem:[#allocation2 + $0x90] sm:$0xff] }
  0x75   :  { %861 = vmatpush1.bf16.msra.mxu1 %v860_v49 }
  0x76   :  { %813 = vmatpush1.bf16.msra.mxu0 %v812_v17  ;;  %863 = vmatprep.subr.bf16.mxu1 %v862_v51  ;;  %v137_v17 = vld [vmem:[#allocation2 + $0xd8] sm:$0xff] }
  0x79   :  { %283 = vmatmul.mubr.f32.vlgmr.msra.gmra.mrb[0].mxu0 %v110_v24  ;;  %865 = vmatpush1.bf16.msra.mxu1 %v864_v57  ;;  %v501_v24 = vld [vmem:[#allocation7 + $0x1d0] sm:$0xff] }
  0x7a   :  { %288 = vmatprep.mubr.f32.mxu0 %v113_v26  ;;  %867 = vmatprep.subr.bf16.mxu1 %v866_v59  ;;  %v872_v25 = vpack.c.bf16 %v501_v24, %v499_v23  ;;  %v504_v26 = vld [vmem:[#allocation7 + $0x1e8] sm:$0xff] }
  0x7b   :  { %v874_v28 = vpack.c.bf16 %v506_v27, %v504_v26 }
  0x7d   :  { %289 = vmatmul.mubr.f32.gmra.mrb[2].mxu0 %v112_v32  ;;  %869 = vmatpush1.bf16.msra.mxu1 %v868_v1  ;;  %v68_v32 = vlaneseq }
  0x7e   :  { %294 = vmatprep.mubr.f32.mxu0 %v115_v34  ;;  %871 = vmatprep.subr.bf16.mxu1 %v870_v3 }
  0x7f   :  { %v1066_v33 = vshrl.u32 %v68_v32, 7 }
  0x81   :  { %295 = vmatmul.mubr.f32.gmra.mrb[4].mxu0 %v114_v40  ;;  %873 = vmatpush1.bf16.msra.mxu1 %v872_v25  ;;  %v70_v34 = vsub.s32 0, %v1066_v33  ;;  %v74_v36 = vsub.s32 1, %v1066_v33 }
  0x82   :  { %300 = vmatprep.mubr.f32.mxu0 %v117_v42  ;;  %875 = vmatprep.subr.bf16.mxu1 %v874_v28 }
  0x83   :  { %v1075_v37 = vrot.slane %v206_v35, %v70_v34  ;;  %v1079_v38 = vrot.slane %v206_v35, %v74_v36 }
  0x85   :  { %301 = vmatmul.mubr.f32.gmra.mrb[6].mxu0 %v116_v48  ;;  %877 = vmatpush1.bf16.msra.mxu1 %v876_v31 }
  0x86   :  { %306 = vmatprep.mubr.f32.mxu0 %v119_v50 }
  0x89   :  { %307 = vmatmul.mubr.f32.gmra.mrb[8].mxu0 %v118_v56 }
  0x8a   :  { %312 = vmatprep.mubr.f32.mxu0 %v121_v58 }
  0x8d   :  { %313 = vmatmul.mubr.f32.gmra.mrb[10].mxu0 %v120_v0 }
  0x8e   :  { %318 = vmatprep.mubr.f32.mxu0 %v123_v2 }
  0x91   :  { %319 = vmatmul.mubr.f32.gmra.mrb[12].mxu0 %v122_v4 }
  0x92   :  { %324 = vmatprep.mubr.f32.mxu0 %v125_v5 }
  0x95   :  { %325 = vmatmul.mubr.f32.gmra.mrb[14].mxu0 %v124_v6 }
  0x96   :  { %330 = vmatprep.mubr.f32.mxu0 %v127_v7 }
  0x99   :  { %331 = vmatmul.mubr.f32.gmra.mrb[16].mxu0 %v126_v8 }
  0x9a   :  { %336 = vmatprep.mubr.f32.mxu0 %v129_v9 }
  0x9d   :  { %337 = vmatmul.mubr.f32.gmra.mrb[18].mxu0 %v128_v10 }
  0x9e   :  { %342 = vmatprep.mubr.f32.mxu0 %v131_v11 }
  0xa1   :  { %343 = vmatmul.mubr.f32.gmra.mrb[20].mxu0 %v130_v12 }
  0xa2   :  { %348 = vmatprep.mubr.f32.mxu0 %v133_v13 }
  0xa5   :  { %349 = vmatmul.mubr.f32.gmra.mrb[22].mxu0 %v132_v14 }
  0xa6   :  { %354 = vmatprep.mubr.f32.mxu0 %v135_v15 }
  0xa9   :  { %355 = vmatmul.mubr.f32.gmra.mrb[24].mxu0 %v134_v16 }
  0xaa   :  { %360 = vmatprep.mubr.f32.mxu0 %v137_v17 }
  0xad   :  { %361 = vmatmul.mubr.f32.gmra.mrb[26].mxu0 %v136_v18 }
  0xae   :  { %366 = vmatprep.mubr.f32.mxu0 %v139_v19 }
  0xb1   :  { %367 = vmatmul.mubr.f32.gmra.mrb[28].mxu0 %v138_v20 }
  0xb2   :  { %372 = vmatprep.mubr.f32.mxu0 %v141_v21 }
  0xb5   :  { %373 = vmatmul.mubr.f32.gmra.mrb[30].mxu0 %v140_v22 }
 0x14c   :  { %v284_v39 = vpop.f32.mrb[0].mxu0 }
 0x14d   :  { %v285_v40 = vadd.f32 %v284_v39, %v1075_v37  ;;  %v286_v41 = vpop.f32.mrb[1].mxu0 }
 0x14e   :  { %v287_v42 = vadd.f32 %v286_v41, %v1079_v38 }
 0x14f   :  { %v379_v45 = vmax.f32 %v285_v40, 0.0 }
 0x150   :  { %v290_v43 = vpop.f32.mrb[2].mxu0  ;;  %v380_v44 = vmax.f32 %v287_v42, 0.0 }
 0x151   :  { %v291_v46 = vadd.f32 %v290_v43, %v1075_v37  ;;  %v292_v47 = vpop.f32.mrb[3].mxu0 }
 0x152   :  { %v293_v48 = vadd.f32 %v292_v47, %v1079_v38  ;;  %571 = vmatprep.mubr.f32.mxu1 %v380_v44 }
 0x153   :  { %572 = vmatmul.mubr.f32.vlgmr.msra.gmra.mrb[0].mxu1 %v379_v45  ;;  %v381_v51 = vmax.f32 %v291_v46, 0.0 }
 0x154   :  { %v382_v49 = vmax.f32 %v293_v48, 0.0  ;;  %v296_v50 = vpop.f32.mrb[4].mxu0 }
 0x155   :  { %v297_v52 = vadd.f32 %v296_v50, %v1075_v37  ;;  %v298_v53 = vpop.f32.mrb[5].mxu0 }
 0x156   :  { %v299_v54 = vadd.f32 %v298_v53, %v1079_v38  ;;  %577 = vmatprep.mubr.f32.mxu1 %v382_v49 }
 0x157   :  { %578 = vmatmul.mubr.f32.gmra.mrb[2].mxu1 %v381_v51  ;;  %v383_v57 = vmax.f32 %v297_v52, 0.0 }
 0x158   :  { %v384_v55 = vmax.f32 %v299_v54, 0.0  ;;  %v302_v56 = vpop.f32.mrb[6].mxu0 }
 0x159   :  { %v303_v58 = vadd.f32 %v302_v56, %v1075_v37  ;;  %v304_v59 = vpop.f32.mrb[7].mxu0 }
 0x15a   :  { %v305_v60 = vadd.f32 %v304_v59, %v1079_v38  ;;  %583 = vmatprep.mubr.f32.mxu1 %v384_v55 }
 0x15b   :  { %584 = vmatmul.mubr.f32.gmra.mrb[4].mxu1 %v383_v57  ;;  %v385_v63 = vmax.f32 %v303_v58, 0.0 }
 0x15c   :  { %v386_v61 = vmax.f32 %v305_v60, 0.0  ;;  %v308_v62 = vpop.f32.mrb[8].mxu0 }
 0x15d   :  { %v309_v0 = vadd.f32 %v308_v62, %v1075_v37  ;;  %v310_v1 = vpop.f32.mrb[9].mxu0 }
 0x15e   :  { %v311_v2 = vadd.f32 %v310_v1, %v1079_v38  ;;  %589 = vmatprep.mubr.f32.mxu1 %v386_v61 }
 0x15f   :  { %590 = vmatmul.mubr.f32.gmra.mrb[6].mxu1 %v385_v63  ;;  %v387_v5 = vmax.f32 %v309_v0, 0.0 }
 0x160   :  { %v388_v3 = vmax.f32 %v311_v2, 0.0  ;;  %v314_v4 = vpop.f32.mrb[10].mxu0 }
 0x161   :  { %v315_v6 = vadd.f32 %v314_v4, %v1075_v37  ;;  %v316_v7 = vpop.f32.mrb[11].mxu0 }
 0x162   :  { %v317_v8 = vadd.f32 %v316_v7, %v1079_v38  ;;  %595 = vmatprep.mubr.f32.mxu1 %v388_v3 }
 0x163   :  { %596 = vmatmul.mubr.f32.gmra.mrb[8].mxu1 %v387_v5  ;;  %v389_v11 = vmax.f32 %v315_v6, 0.0 }
 0x164   :  { %v390_v9 = vmax.f32 %v317_v8, 0.0  ;;  %v320_v10 = vpop.f32.mrb[12].mxu0 }
 0x165   :  { %v321_v12 = vadd.f32 %v320_v10, %v1075_v37  ;;  %v322_v13 = vpop.f32.mrb[13].mxu0 }
 0x166   :  { %v323_v14 = vadd.f32 %v322_v13, %v1079_v38  ;;  %601 = vmatprep.mubr.f32.mxu1 %v390_v9 }
 0x167   :  { %602 = vmatmul.mubr.f32.gmra.mrb[10].mxu1 %v389_v11  ;;  %v391_v17 = vmax.f32 %v321_v12, 0.0  ;;  %v66_v12 = vld [vmem:[%s1175_s4] sm:$0x3]  ;;  %s983_s4 = smov [#allocation8]  }
 0x168   :  { %v392_v15 = vmax.f32 %v323_v14, 0.0  ;;  %v326_v16 = vpop.f32.mrb[14].mxu0  ;;  %v1118_v13 = vrot.slane %v66_v12, %v70_v34  ;;  %s737_s8 = sshll.u32 %s983_s4, 4  ;;  %s738_s8 = int_to_ptr.vmem [resolvable:$true] %s737_s8 }
 0x169   :  { %v327_v18 = vadd.f32 %v326_v16, %v1075_v37  ;;  %v328_v19 = vpop.f32.mrb[15].mxu0  ;;  %s950_s9 = scalar_lea.vmem %s738_s8, 4096  ;;  %p955_p11 = scmp.lt.s32.totalorder %s738_s8, %s738_s8 }
 0x16a   :  { %v329_v20 = vadd.f32 %v328_v19, %v1079_v38  ;;  %607 = vmatprep.mubr.f32.mxu1 %v392_v15  ;;  %p951_p10 = scmp.ne.s32.totalorder %s738_s8, %s950_s9  ;;  %p956_p12 = scmp.lt.s32.totalorder %s950_s9, %s950_s9 }
 0x16b   :  { %608 = vmatmul.mubr.f32.gmra.mrb[12].mxu1 %v391_v17  ;;  %v393_v23 = vmax.f32 %v327_v18, 0.0 }
 0x16c   :  { %v394_v21 = vmax.f32 %v329_v20, 0.0  ;;  %v332_v22 = vpop.f32.mrb[16].mxu0  ;;  %p957_p13 = por %p956_p12, %p955_p11 }
 0x16d   :  { %v333_v24 = vadd.f32 %v332_v22, %v1075_v37  ;;  %v334_v25 = vpop.f32.mrb[17].mxu0 }
 0x16e   :  { %v335_v26 = vadd.f32 %v334_v25, %v1079_v38  ;;  %613 = vmatprep.mubr.f32.mxu1 %v394_v21  ;;  %p958_p0 = pnand %p957_p13, %p951_p10 }
 0x16f   :  { %614 = vmatmul.mubr.f32.gmra.mrb[14].mxu1 %v393_v23  ;;  %v395_v29 = vmax.f32 %v333_v24, 0.0 }
 0x170   :  { %v396_v27 = vmax.f32 %v335_v26, 0.0  ;;  %v338_v28 = vpop.f32.mrb[18].mxu0 }
 0x171   :  { %v339_v30 = vadd.f32 %v338_v28, %v1075_v37  ;;  %v340_v31 = vpop.f32.mrb[19].mxu0 }
 0x172   :  { %v341_v32 = vadd.f32 %v340_v31, %v1079_v38  ;;  %619 = vmatprep.mubr.f32.mxu1 %v396_v27 }
 0x173   :  { %620 = vmatmul.mubr.f32.gmra.mrb[16].mxu1 %v395_v29  ;;  %v397_v40 = vmax.f32 %v339_v30, 0.0 }
 0x174   :  { %v398_v35 = vmax.f32 %v341_v32, 0.0  ;;  %v344_v39 = vpop.f32.mrb[20].mxu0 }
 0x175   :  { %v345_v41 = vadd.f32 %v344_v39, %v1075_v37  ;;  %v346_v42 = vpop.f32.mrb[21].mxu0 }
 0x176   :  { %v347_v43 = vadd.f32 %v346_v42, %v1079_v38  ;;  %625 = vmatprep.mubr.f32.mxu1 %v398_v35 }
 0x177   :  { %626 = vmatmul.mubr.f32.gmra.mrb[18].mxu1 %v397_v40  ;;  %v399_v46 = vmax.f32 %v345_v41, 0.0 }
 0x178   :  { %v400_v44 = vmax.f32 %v347_v43, 0.0  ;;  %v350_v45 = vpop.f32.mrb[22].mxu0 }
 0x179   :  { %v351_v47 = vadd.f32 %v350_v45, %v1075_v37  ;;  %v352_v48 = vpop.f32.mrb[23].mxu0 }
 0x17a   :  { %v353_v49 = vadd.f32 %v352_v48, %v1079_v38  ;;  %631 = vmatprep.mubr.f32.mxu1 %v400_v44 }
 0x17b   :  { %632 = vmatmul.mubr.f32.gmra.mrb[20].mxu1 %v399_v46  ;;  %v401_v52 = vmax.f32 %v351_v47, 0.0 }
 0x17c   :  { %v402_v50 = vmax.f32 %v353_v49, 0.0  ;;  %v356_v51 = vpop.f32.mrb[24].mxu0 }
 0x17d   :  { %v357_v53 = vadd.f32 %v356_v51, %v1075_v37  ;;  %v358_v54 = vpop.f32.mrb[25].mxu0 }
 0x17e   :  { %v359_v55 = vadd.f32 %v358_v54, %v1079_v38  ;;  %637 = vmatprep.mubr.f32.mxu1 %v402_v50 }
 0x17f   :  { %638 = vmatmul.mubr.f32.gmra.mrb[22].mxu1 %v401_v52  ;;  %v403_v58 = vmax.f32 %v357_v53, 0.0 }
 0x180   :  { %v404_v56 = vmax.f32 %v359_v55, 0.0  ;;  %v362_v57 = vpop.f32.mrb[26].mxu0 }
 0x181   :  { %v363_v59 = vadd.f32 %v362_v57, %v1075_v37  ;;  %v364_v60 = vpop.f32.mrb[27].mxu0 }
 0x182   :  { %v365_v61 = vadd.f32 %v364_v60, %v1079_v38  ;;  %643 = vmatprep.mubr.f32.mxu1 %v404_v56 }
 0x183   :  { %644 = vmatmul.mubr.f32.gmra.mrb[24].mxu1 %v403_v58  ;;  %v405_v0 = vmax.f32 %v363_v59, 0.0 }
 0x184   :  { %v406_v62 = vmax.f32 %v365_v61, 0.0  ;;  %v368_v63 = vpop.f32.mrb[28].mxu0 }
 0x185   :  { %v369_v1 = vadd.f32 %v368_v63, %v1075_v37  ;;  %v370_v2 = vpop.f32.mrb[29].mxu0 }
 0x186   :  { %v371_v3 = vadd.f32 %v370_v2, %v1079_v38  ;;  %649 = vmatprep.mubr.f32.mxu1 %v406_v62 }
 0x187   :  { %650 = vmatmul.mubr.f32.gmra.mrb[26].mxu1 %v405_v0  ;;  %v407_v6 = vmax.f32 %v369_v1, 0.0 }
 0x188   :  { %v408_v4 = vmax.f32 %v371_v3, 0.0  ;;  %v374_v5 = vpop.f32.mrb[30].mxu0 }
 0x189   :  { %v375_v7 = vadd.f32 %v374_v5, %v1075_v37  ;;  %v376_v8 = vpop.f32.mrb[31].mxu0  ;;  %v1122_v37 = vrot.slane %v66_v12, %v74_v36 }
 0x18a   :  { %v377_v9 = vadd.f32 %v376_v8, %v1079_v38  ;;  %655 = vmatprep.mubr.f32.mxu1 %v408_v4 }
 0x18b   :  { %656 = vmatmul.mubr.f32.gmra.mrb[28].mxu1 %v407_v6  ;;  %v409_v11 = vmax.f32 %v375_v7, 0.0 }
 0x18c   :  { %v410_v10 = vmax.f32 %v377_v9, 0.0 }
 0x18e   :  { %661 = vmatprep.mubr.f32.mxu1 %v410_v10 }
 0x18f   :  { %662 = vmatmul.mubr.f32.gmra.mrb[30].mxu1 %v409_v11 }
 0x226   :  { %v573_v14 = vpop.f32.mrb[0].mxu1 }
 0x227   :  { %v668_v38 = vadd.f32 %v573_v14, %v1118_v13  ;;  %v575_v15 = vpop.f32.mrb[1].mxu1 }
 0x228   :  { %v669_v16 = vadd.f32 %v575_v15, %v1122_v37 }
 0x229   :  { %700 = vst [vmem:[#allocation8] sm:$0xff] %v668_v38 }
 0x22a   :  { %701 = vst [vmem:[#allocation8 + $0x8] sm:$0xff] %v669_v16  ;;  %v579_v17 = vpop.f32.mrb[2].mxu1 }
 0x22b   :  { %v670_v18 = vadd.f32 %v579_v17, %v1118_v13  ;;  %v581_v19 = vpop.f32.mrb[3].mxu1 }
 0x22c   :  { %v671_v20 = vadd.f32 %v581_v19, %v1122_v37 }
 0x22d   :  { %702 = vst [vmem:[#allocation8 + $0x10] sm:$0xff] %v670_v18 }
 0x22e   :  { %703 = vst [vmem:[#allocation8 + $0x18] sm:$0xff] %v671_v20  ;;  %v585_v34 = vpop.f32.mrb[4].mxu1 }
 0x22f   :  { %v672_v33 = vadd.f32 %v585_v34, %v1118_v13  ;;  %v587_v36 = vpop.f32.mrb[5].mxu1 }
 0x230   :  { %v673_v21 = vadd.f32 %v587_v36, %v1122_v37 }
 0x231   :  { %704 = vst [vmem:[#allocation8 + $0x20] sm:$0xff] %v672_v33 }
 0x232   :  { %705 = vst [vmem:[#allocation8 + $0x28] sm:$0xff] %v673_v21  ;;  %v591_v22 = vpop.f32.mrb[6].mxu1 }
 0x233   :  { %v674_v23 = vadd.f32 %v591_v22, %v1118_v13  ;;  %v593_v24 = vpop.f32.mrb[7].mxu1 }
 0x234   :  { %v675_v25 = vadd.f32 %v593_v24, %v1122_v37 }
 0x235   :  { %706 = vst [vmem:[#allocation8 + $0x30] sm:$0xff] %v674_v23 }
 0x236   :  { %707 = vst [vmem:[#allocation8 + $0x38] sm:$0xff] %v675_v25  ;;  %v597_v26 = vpop.f32.mrb[8].mxu1 }
 0x237   :  { %v676_v27 = vadd.f32 %v597_v26, %v1118_v13  ;;  %v599_v28 = vpop.f32.mrb[9].mxu1 }
 0x238   :  { %v677_v29 = vadd.f32 %v599_v28, %v1122_v37 }
 0x239   :  { %708 = vst [vmem:[#allocation8 + $0x40] sm:$0xff] %v676_v27 }
 0x23a   :  { %709 = vst [vmem:[#allocation8 + $0x48] sm:$0xff] %v677_v29  ;;  %v603_v30 = vpop.f32.mrb[10].mxu1 }
 0x23b   :  { %v678_v31 = vadd.f32 %v603_v30, %v1118_v13  ;;  %v605_v32 = vpop.f32.mrb[11].mxu1 }
 0x23c   :  { %v679_v35 = vadd.f32 %v605_v32, %v1122_v37 }
 0x23d   :  { %710 = vst [vmem:[#allocation8 + $0x50] sm:$0xff] %v678_v31 }
 0x23e   :  { %711 = vst [vmem:[#allocation8 + $0x58] sm:$0xff] %v679_v35  ;;  %v609_v39 = vpop.f32.mrb[12].mxu1 }
 0x23f   :  { %v680_v40 = vadd.f32 %v609_v39, %v1118_v13  ;;  %v611_v41 = vpop.f32.mrb[13].mxu1 }
 0x240   :  { %v681_v42 = vadd.f32 %v611_v41, %v1122_v37 }
 0x241   :  { %712 = vst [vmem:[#allocation8 + $0x60] sm:$0xff] %v680_v40 }
 0x242   :  { %713 = vst [vmem:[#allocation8 + $0x68] sm:$0xff] %v681_v42  ;;  %v615_v43 = vpop.f32.mrb[14].mxu1 }
 0x243   :  { %v682_v44 = vadd.f32 %v615_v43, %v1118_v13  ;;  %v617_v45 = vpop.f32.mrb[15].mxu1 }
 0x244   :  { %v683_v46 = vadd.f32 %v617_v45, %v1122_v37 }
 0x245   :  { %714 = vst [vmem:[#allocation8 + $0x70] sm:$0xff] %v682_v44 }
 0x246   :  { %715 = vst [vmem:[#allocation8 + $0x78] sm:$0xff] %v683_v46  ;;  %v621_v47 = vpop.f32.mrb[16].mxu1 }
 0x247   :  { %v684_v48 = vadd.f32 %v621_v47, %v1118_v13  ;;  %v623_v49 = vpop.f32.mrb[17].mxu1 }
 0x248   :  { %v685_v50 = vadd.f32 %v623_v49, %v1122_v37 }
 0x249   :  { %716 = vst [vmem:[#allocation8 + $0x80] sm:$0xff] %v684_v48 }
 0x24a   :  { %717 = vst [vmem:[#allocation8 + $0x88] sm:$0xff] %v685_v50  ;;  %v627_v51 = vpop.f32.mrb[18].mxu1 }
 0x24b   :  { %v686_v52 = vadd.f32 %v627_v51, %v1118_v13  ;;  %v629_v53 = vpop.f32.mrb[19].mxu1 }
 0x24c   :  { %v687_v54 = vadd.f32 %v629_v53, %v1122_v37 }
 0x24d   :  { %718 = vst [vmem:[#allocation8 + $0x90] sm:$0xff] %v686_v52 }
 0x24e   :  { %719 = vst [vmem:[#allocation8 + $0x98] sm:$0xff] %v687_v54  ;;  %v633_v55 = vpop.f32.mrb[20].mxu1 }
 0x24f   :  { %v688_v56 = vadd.f32 %v633_v55, %v1118_v13  ;;  %v635_v57 = vpop.f32.mrb[21].mxu1 }
 0x250   :  { %v689_v58 = vadd.f32 %v635_v57, %v1122_v37 }
 0x251   :  { %720 = vst [vmem:[#allocation8 + $0xa0] sm:$0xff] %v688_v56 }
 0x252   :  { %721 = vst [vmem:[#allocation8 + $0xa8] sm:$0xff] %v689_v58  ;;  %v639_v59 = vpop.f32.mrb[22].mxu1 }
 0x253   :  { %v690_v60 = vadd.f32 %v639_v59, %v1118_v13  ;;  %v641_v61 = vpop.f32.mrb[23].mxu1 }
 0x254   :  { %v691_v62 = vadd.f32 %v641_v61, %v1122_v37 }
 0x255   :  { %722 = vst [vmem:[#allocation8 + $0xb0] sm:$0xff] %v690_v60 }
 0x256   :  { %723 = vst [vmem:[#allocation8 + $0xb8] sm:$0xff] %v691_v62  ;;  %v645_v63 = vpop.f32.mrb[24].mxu1 }
 0x257   :  { %v692_v0 = vadd.f32 %v645_v63, %v1118_v13  ;;  %v647_v1 = vpop.f32.mrb[25].mxu1 }
 0x258   :  { %v693_v2 = vadd.f32 %v647_v1, %v1122_v37 }
 0x259   :  { %724 = vst [vmem:[#allocation8 + $0xc0] sm:$0xff] %v692_v0 }
 0x25a   :  { %725 = vst [vmem:[#allocation8 + $0xc8] sm:$0xff] %v693_v2  ;;  %v651_v3 = vpop.f32.mrb[26].mxu1 }
 0x25b   :  { %v694_v4 = vadd.f32 %v651_v3, %v1118_v13  ;;  %v653_v5 = vpop.f32.mrb[27].mxu1 }
 0x25c   :  { %v695_v6 = vadd.f32 %v653_v5, %v1122_v37 }
 0x25d   :  { %726 = vst [vmem:[#allocation8 + $0xd0] sm:$0xff] %v694_v4 }
 0x25e   :  { %727 = vst [vmem:[#allocation8 + $0xd8] sm:$0xff] %v695_v6  ;;  %v657_v7 = vpop.f32.mrb[28].mxu1 }
 0x25f   :  { %v696_v8 = vadd.f32 %v657_v7, %v1118_v13  ;;  %v659_v9 = vpop.f32.mrb[29].mxu1 }
 0x260   :  { %v697_v10 = vadd.f32 %v659_v9, %v1122_v37 }
 0x261   :  { %728 = vst [vmem:[#allocation8 + $0xe0] sm:$0xff] %v696_v8 }
 0x262   :  { %729 = vst [vmem:[#allocation8 + $0xe8] sm:$0xff] %v697_v10  ;;  %v663_v11 = vpop.f32.mrb[30].mxu1 }
 0x263   :  { %v698_v12 = vadd.f32 %v663_v11, %v1118_v13  ;;  %v665_v14 = vpop.f32.mrb[31].mxu1 }
 0x264   :  { %v699_v38 = vadd.f32 %v665_v14, %v1122_v37 }
 0x265   :  { %730 = vst [vmem:[#allocation8 + $0xf0] sm:$0xff] %v698_v12 }
 0x266   :  { %731 = vst [vmem:[#allocation8 + $0xf8] sm:$0xff] %v699_v38 }
 0x267   :  { %961 = shalt.err (!%p958_p0)
}
 0x268   :  { %s962_s12 = scalar_lea.hbm %s1176_s5, 4096 }
 0x269   :  { %p963_p1 = scmp.ne.s32.totalorder %s1176_s5, %s962_s12  ;;  %p966_p2 = scmp.lt.u32.totalorder %s962_s12, %s1176_s5 }
 0x26b   :  { %p968_p3 = pnand %p966_p2, %p963_p1 }
 0x26d   :  { %971 = shalt.err (!%p968_p3)
}
 0x26e   :  { %743 = dma.vmem_to_hbm [thread:$0]  %s738_s8, 4096, %s1176_s5, [#allocation4], %s980_s30, %s980_s30, %s981_s6  }
 0x26f   :  { %976 = dma.done.wait [#allocation4], 4096  }
 0x270   :  { %977 = vsyncadd [#allocation4], 4294963200 }
 0x271   :  { %747 = vsyncpa [#allocation3], 1 }
 0x272   :  { %748 = vsyncpa [#allocation6], 1 }
 0x273   :  { %749 = vsyncpa [#allocation4], 1 }

</bundles_post_ra>
